<compile_context>
chip_gen: v6e
topology: v6e:2x2x1
jax: 0.10.0
libtpu: 0.0.40
codegen_flags: <defaults>
</compile_context>

<pallas_src>
import jax
import jax.numpy as jnp
from jax.experimental import pallas as pl
from jax.experimental.pallas import tpu as pltpu


def _round_up(n, m):
    return ((n + m - 1) // m) * m


_TB_MAX = 256  # batch-tile rows; small enough for v7x's 64 MiB VMEM, big
               # enough to amortize per-grid-step overhead at serving batches.


# ----------------------------- Fused Pallas kernel -----------------------------

def _make_fused_mlp_kernel(num_hidden):
    """Build a kernel: x -> [Linear+ReLU]*num_hidden -> Linear -> log_softmax.

    Ref order: x, (w, b) * num_hidden, out_w, out_b, o.
    x and weights are bf16 (padded, lane-dense); biases f32 (1, M);
    accumulation and epilogue are f32. Padded output lanes carry a -1e30 bias
    (baked in at init) so they vanish from the normalizer with no extra ops.
    """

    def kernel(*refs):
        x_ref = refs[0]
        o_ref = refs[-1]

        h = x_ref[...]  # (TB, K) bf16
        idx = 1
        for _ in range(num_hidden):
            w_ref, b_ref = refs[idx], refs[idx + 1]
            idx += 2
            y = jnp.dot(h, w_ref[...], preferred_element_type=jnp.float32)
            h = jnp.maximum(y + b_ref[...], 0.0).astype(jnp.bfloat16)
            # dropout (eval mode) == identity

        w_ref, b_ref = refs[idx], refs[idx + 1]
        y = jnp.dot(h, w_ref[...], preferred_element_type=jnp.float32)
        y = y + b_ref[...]  # padded lanes: 0 + (-1e30) -> drop out of softmax

        m = jnp.max(y, axis=1, keepdims=True)
        z = y - m
        lse = jnp.log(jnp.sum(jnp.exp(z), axis=1, keepdims=True))
        o_ref[...] = z - lse  # padded lanes very negative; sliced off outside

    return kernel


def _fused_forward(x_padded, hidden_params, out_w, out_b, tb):
    """Fused MLP with a batch grid; weights/biases stay VMEM-resident."""
    N, K = x_padded.shape
    M = out_w.shape[1]
    num_hidden = len(hidden_params)

    inputs = [x_padded]
    in_specs = [pl.BlockSpec((tb, K), lambda i: (i, 0))]
    for w, b in hidden_params:
        inputs += [w, b]
        in_specs += [pl.BlockSpec(w.shape, lambda i: (0, 0)),
                     pl.BlockSpec(b.shape, lambda i: (0, 0))]
    inputs += [out_w, out_b]
    in_specs += [pl.BlockSpec(out_w.shape, lambda i: (0, 0)),
                 pl.BlockSpec(out_b.shape, lambda i: (0, 0))]

    return pl.pallas_call(
        _make_fused_mlp_kernel(num_hidden),
        out_shape=jax.ShapeDtypeStruct((N, M), jnp.float32),
        grid=(N // tb,),
        in_specs=in_specs,
        out_specs=pl.BlockSpec((tb, M), lambda i: (i, 0)),  # lane-dense
        compiler_params=pltpu.CompilerParams(
            dimension_semantics=("parallel",)),
    )(*inputs)


# ----------------------------- Module wrapper -----------------------------

class ClassifierPallas:
    """JAX/Pallas re-implementation of the PyTorch `Classifier` forward pass."""

    def __init__(self, input_size, output_size, hidden_layers, drop_p=0.5, key=None):
        if key is None:
            key = jax.random.PRNGKey(0)
        self.drop_p = drop_p  # eval-mode: dropout is identity
        self.input_size = input_size
        self.output_size = output_size

        # Lane-dense padded widths (multiples of 128).
        self.in_pad = _round_up(input_size, 128)
        hid_pad = [_round_up(h, 128) for h in hidden_layers]
        self.out_pad = _round_up(output_size, 128)

        sizes = [input_size] + list(hidden_layers)
        sizes_pad = [self.in_pad] + hid_pad

        # Hidden layers: zero-padded, weights bf16 (MXU), biases f32 (1, M).
        self.hidden_params = []
        for (h_in, h_out), (p_in, p_out) in zip(zip(sizes[:-1], sizes[1:]),
                                                zip(sizes_pad[:-1], sizes_pad[1:])):
            key, kw, kb = jax.random.split(key, 3)
            bound = 1.0 / float(h_in) ** 0.5  # mimic nn.Linear init range
            w = jax.random.uniform(kw, (h_in, h_out), jnp.float32, -bound, bound)
            b = jax.random.uniform(kb, (h_out,), jnp.float32, -bound, bound)
            w_p = jnp.zeros((p_in, p_out), jnp.float32).at[:h_in, :h_out].set(w)
            b_p = jnp.zeros((1, p_out), jnp.float32).at[0, :h_out].set(b)
            self.hidden_params.append((w_p.astype(jnp.bfloat16), b_p))

        # Output layer: zero-padded weight columns; padded bias lanes = -1e30
        # so they drop out of the log-softmax normalizer with no in-kernel mask.
        key, kw, kb = jax.random.split(key, 3)
        h_last, p_last = hidden_layers[-1], hid_pad[-1]
        bound = 1.0 / float(h_last) ** 0.5
        w = jax.random.uniform(kw, (h_last, output_size), jnp.float32, -bound, bound)
        b = jax.random.uniform(kb, (output_size,), jnp.float32, -bound, bound)
        self.out_w = (jnp.zeros((p_last, self.out_pad), jnp.float32)
                      .at[:h_last, :output_size].set(w)).astype(jnp.bfloat16)
        self.out_b = (jnp.full((1, self.out_pad), -1e30, jnp.float32)
                      .at[0, :output_size].set(b))

        self._forward = jax.jit(self._forward_impl)

    def _forward_impl(self, x):
        n = x.shape[0]
        x = x.reshape(n, -1)
        k = x.shape[1]

        # Batch tile: multiple of 16 (bf16 LHS packing); cap at _TB_MAX so VMEM
        # stays bounded (weights-resident + double-buffered x/out tiles).
        if n <= _TB_MAX:
            n_pad = max(_round_up(n, 16), 16)
            tb = n_pad
        else:
            n_pad = _round_up(n, _TB_MAX)
            tb = _TB_MAX

        x = x.astype(jnp.bfloat16)  # halve x HBM->VMEM bytes; MXU-native LHS
        if (n_pad != n) or (self.in_pad != k):  # skip pad when statically a no-op
            x = jnp.pad(x, ((0, n_pad - n), (0, self.in_pad - k)))

        out = _fused_forward(x, self.hidden_params, self.out_w, self.out_b, tb)
        return out[:n, :self.output_size]

    def __call__(self, x):
        return self._forward(x)


# Pure-JAX reference (same bf16 inputs/weights, f32 accumulation) for a check.
def _ref_forward(model, x):
    n = x.shape[0]
    h = x.reshape(n, -1).astype(jnp.bfloat16)
    if h.shape[1] != model.in_pad:
        h = jnp.pad(h, ((0, 0), (0, model.in_pad - h.shape[1])))
    for w, b in model.hidden_params:
        y = jnp.dot(h, w, preferred_element_type=jnp.float32) + b
        h = jnp.maximum(y, 0.0).astype(jnp.bfloat16)
    y = jnp.dot(h, model.out_w, preferred_element_type=jnp.float32) + model.out_b
    y = y[:, :model.output_size]
    return jax.nn.log_softmax(y, axis=1)


# ----------------------------- Smoke test -----------------------------

if __name__ == "__main__":
    key = jax.random.PRNGKey(0)
    key_x, key_p = jax.random.split(key)

    # Input: (batch=2, channels=4, H=16, W=16) -> flattened input_size = 1024
    x = jax.random.normal(key_x, (2, 4, 16, 16), dtype=jnp.float32)

    model = ClassifierPallas(
        input_size=4 * 16 * 16,
        output_size=10,
        hidden_layers=[128, 64],
        drop_p=0.5,
        key=key_p,
    )

    out = jax.block_until_ready(model(x))
    ref = jax.block_until_ready(_ref_forward(model, x))

    assert out.shape == (2, 10)
    # log_softmax rows exponentiate-sum to ~1
    row_sums = jnp.sum(jnp.exp(out), axis=1)
    assert bool(jnp.all(jnp.abs(row_sums - 1.0) < 1e-4))
    # matches pure-JAX reference
    assert bool(jnp.all(jnp.abs(out - ref) < 1e-3))

    print("KERNEL_OK")
</pallas_src>

<mosaic_0001>
module attributes {stable_mosaic.version = 11 : i64} {
  func.func @kernel(%arg0: i32, %arg1: memref<16x1024xbf16, #tpu.memory_space<vmem>>, %arg2: memref<1024x128xbf16, #tpu.memory_space<vmem>>, %arg3: memref<1x128xf32, #tpu.memory_space<vmem>>, %arg4: memref<128x128xbf16, #tpu.memory_space<vmem>>, %arg5: memref<1x128xf32, #tpu.memory_space<vmem>>, %arg6: memref<128x128xbf16, #tpu.memory_space<vmem>>, %arg7: memref<1x128xf32, #tpu.memory_space<vmem>>, %arg8: memref<16x128xf32, #tpu.memory_space<vmem>>) attributes {dimension_semantics = [#tpu.dimension_semantics<parallel>], iteration_bounds = array<i64: 1>, scalar_prefetch = 0 : i64, scratch_operands = 0 : i64, tpu.core_type = #tpu.core_type<tc>, window_params = [{transform_indices = @transform_0, window_bounds = array<i64: 16, 1024>}, {pipeline_mode = #tpu.pipeline_mode<synchronous>, transform_indices = @transform_1, window_bounds = array<i64: 1024, 128>}, {pipeline_mode = #tpu.pipeline_mode<synchronous>, transform_indices = @transform_2, window_bounds = array<i64: 1, 128>}, {pipeline_mode = #tpu.pipeline_mode<synchronous>, transform_indices = @transform_3, window_bounds = array<i64: 128, 128>}, {pipeline_mode = #tpu.pipeline_mode<synchronous>, transform_indices = @transform_4, window_bounds = array<i64: 1, 128>}, {pipeline_mode = #tpu.pipeline_mode<synchronous>, transform_indices = @transform_5, window_bounds = array<i64: 128, 128>}, {pipeline_mode = #tpu.pipeline_mode<synchronous>, transform_indices = @transform_6, window_bounds = array<i64: 1, 128>}, {transform_indices = @transform_7, window_bounds = array<i64: 16, 128>}]} {
    %c0 = arith.constant 0 : index
    %c0_0 = arith.constant 0 : index
    %0 = vector.load %arg1[%c0, %c0_0] : memref<16x1024xbf16, #tpu.memory_space<vmem>>, vector<16x1024xbf16>
    %c0_1 = arith.constant 0 : index
    %c0_2 = arith.constant 0 : index
    %1 = vector.load %arg2[%c0_1, %c0_2] : memref<1024x128xbf16, #tpu.memory_space<vmem>>, vector<1024x128xbf16>
    %cst = arith.constant dense<0.000000e+00> : vector<16x128xf32>
    %2 = tpu.matmul %0, %1, %cst {dimension_numbers = #tpu.dot_dimension_numbers<[1], [0], [0], [1], [0, 0, 1, 1], [], []>} : vector<16x1024xbf16>, vector<1024x128xbf16>, vector<16x128xf32> -> vector<16x128xf32>
    %c0_3 = arith.constant 0 : index
    %c0_4 = arith.constant 0 : index
    %3 = vector.load %arg3[%c0_3, %c0_4] : memref<1x128xf32, #tpu.memory_space<vmem>>, vector<1x128xf32>
    %4 = vector.broadcast %3 : vector<1x128xf32> to vector<16x128xf32>
    %5 = arith.addf %2, %4 : vector<16x128xf32>
    %cst_5 = arith.constant 0.000000e+00 : f32
    %6 = vector.broadcast %cst_5 : f32 to vector<16x128xf32>
    %7 = arith.maximumf %5, %6 : vector<16x128xf32>
    %8 = arith.truncf %7 : vector<16x128xf32> to vector<16x128xbf16>
    %c0_6 = arith.constant 0 : index
    %c0_7 = arith.constant 0 : index
    %9 = vector.load %arg4[%c0_6, %c0_7] : memref<128x128xbf16, #tpu.memory_space<vmem>>, vector<128x128xbf16>
    %cst_8 = arith.constant dense<0.000000e+00> : vector<16x128xf32>
    %10 = tpu.matmul %8, %9, %cst_8 {dimension_numbers = #tpu.dot_dimension_numbers<[1], [0], [0], [1], [0, 0, 1, 1], [], []>} : vector<16x128xbf16>, vector<128x128xbf16>, vector<16x128xf32> -> vector<16x128xf32>
    %c0_9 = arith.constant 0 : index
    %c0_10 = arith.constant 0 : index
    %11 = vector.load %arg5[%c0_9, %c0_10] : memref<1x128xf32, #tpu.memory_space<vmem>>, vector<1x128xf32>
    %12 = vector.broadcast %11 : vector<1x128xf32> to vector<16x128xf32>
    %13 = arith.addf %10, %12 : vector<16x128xf32>
    %cst_11 = arith.constant 0.000000e+00 : f32
    %14 = vector.broadcast %cst_11 : f32 to vector<16x128xf32>
    %15 = arith.maximumf %13, %14 : vector<16x128xf32>
    %16 = arith.truncf %15 : vector<16x128xf32> to vector<16x128xbf16>
    %c0_12 = arith.constant 0 : index
    %c0_13 = arith.constant 0 : index
    %17 = vector.load %arg6[%c0_12, %c0_13] : memref<128x128xbf16, #tpu.memory_space<vmem>>, vector<128x128xbf16>
    %cst_14 = arith.constant dense<0.000000e+00> : vector<16x128xf32>
    %18 = tpu.matmul %16, %17, %cst_14 {dimension_numbers = #tpu.dot_dimension_numbers<[1], [0], [0], [1], [0, 0, 1, 1], [], []>} : vector<16x128xbf16>, vector<128x128xbf16>, vector<16x128xf32> -> vector<16x128xf32>
    %c0_15 = arith.constant 0 : index
    %c0_16 = arith.constant 0 : index
    %19 = vector.load %arg7[%c0_15, %c0_16] : memref<1x128xf32, #tpu.memory_space<vmem>>, vector<1x128xf32>
    %20 = vector.broadcast %19 : vector<1x128xf32> to vector<16x128xf32>
    %21 = arith.addf %18, %20 : vector<16x128xf32>
    %cst_17 = arith.constant dense<0xFF800000> : vector<16xf32>
    %22 = vector.multi_reduction <maximumf>, %21, %cst_17 [1] : vector<16x128xf32> to vector<16xf32>
    %23 = vector.shape_cast %22 : vector<16xf32> to vector<16x1xf32>
    %24 = vector.broadcast %23 : vector<16x1xf32> to vector<16x128xf32>
    %25 = arith.subf %21, %24 : vector<16x128xf32>
    %26 = math.exp %25 : vector<16x128xf32>
    %cst_18 = arith.constant dense<0.000000e+00> : vector<16xf32>
    %27 = vector.multi_reduction <add>, %26, %cst_18 [1] : vector<16x128xf32> to vector<16xf32>
    %28 = vector.shape_cast %27 : vector<16xf32> to vector<16x1xf32>
    %29 = math.log %28 : vector<16x1xf32>
    %30 = vector.broadcast %29 : vector<16x1xf32> to vector<16x128xf32>
    %31 = arith.subf %25, %30 : vector<16x128xf32>
    %c0_19 = arith.constant 0 : index
    %c0_20 = arith.constant 0 : index
    %32 = vector.load %arg8[%c0_19, %c0_20] : memref<16x128xf32, #tpu.memory_space<vmem>>, vector<16x128xf32>
    tpu.vector_store %arg8[%c0_19, %c0_20], %31 {strides = array<i32>} : memref<16x128xf32, #tpu.memory_space<vmem>>, vector<16x128xf32>,
    return
  }
  func.func @transform_0(%arg0: i32) -> (i32, i32) {
    %c0_i32 = arith.constant 0 : i32
    %c0_i32_0 = arith.constant 0 : i32
    return %arg0, %c0_i32 : i32, i32
  }
  func.func @transform_1(%arg0: i32) -> (i32, i32) {
    %c0_i32 = arith.constant 0 : i32
    %c0_i32_0 = arith.constant 0 : i32
    %c0_i32_1 = arith.constant 0 : i32
    return %c0_i32, %c0_i32_0 : i32, i32
  }
  func.func @transform_2(%arg0: i32) -> (i32, i32) {
    %c0_i32 = arith.constant 0 : i32
    %c0_i32_0 = arith.constant 0 : i32
    %c0_i32_1 = arith.constant 0 : i32
    return %c0_i32, %c0_i32_0 : i32, i32
  }
  func.func @transform_3(%arg0: i32) -> (i32, i32) {
    %c0_i32 = arith.constant 0 : i32
    %c0_i32_0 = arith.constant 0 : i32
    %c0_i32_1 = arith.constant 0 : i32
    return %c0_i32, %c0_i32_0 : i32, i32
  }
  func.func @transform_4(%arg0: i32) -> (i32, i32) {
    %c0_i32 = arith.constant 0 : i32
    %c0_i32_0 = arith.constant 0 : i32
    %c0_i32_1 = arith.constant 0 : i32
    return %c0_i32, %c0_i32_0 : i32, i32
  }
  func.func @transform_5(%arg0: i32) -> (i32, i32) {
    %c0_i32 = arith.constant 0 : i32
    %c0_i32_0 = arith.constant 0 : i32
    %c0_i32_1 = arith.constant 0 : i32
    return %c0_i32, %c0_i32_0 : i32, i32
  }
  func.func @transform_6(%arg0: i32) -> (i32, i32) {
    %c0_i32 = arith.constant 0 : i32
    %c0_i32_0 = arith.constant 0 : i32
    %c0_i32_1 = arith.constant 0 : i32
    return %c0_i32, %c0_i32_0 : i32, i32
  }
  func.func @transform_7(%arg0: i32) -> (i32, i32) {
    %c0_i32 = arith.constant 0 : i32
    %c0_i32_0 = arith.constant 0 : i32
    return %arg0, %c0_i32 : i32, i32
  }
}

</mosaic_0001>

<bundles_post_ra>
// kernel: _forward_impl.1
= control target key start
LH: loop header
LB: loop body
LE: loop exit
PB: predicated region body
PF: predicated region fallthrough
CT: control target
= control target key end

     0   :  { %12 = vsyncpa [#allocation3], 0  ;;  %s1381_s24 = smov [#allocation2]   ;;  %s1534_s0 = inlined_call_operand.vmem [shape: bf16[16,1024], index: 0, kind: input, shape index: {}]   ;;  %s1535_s1 = inlined_call_operand.hbm [shape: bf16[1024,128], index: 1, kind: input, shape index: {}]   ;;  %s1536_s2 = inlined_call_operand.vmem [shape: f32[1,128], index: 2, kind: input, shape index: {}]   ;;  %s1537_s3 = inlined_call_operand.vmem [shape: bf16[128,128], index: 3, kind: input, shape index: {}]   ;;  %s1538_s4 = inlined_call_operand.vmem [shape: f32[1,128], index: 4, kind: input, shape index: {}]   ;;  %s1539_s5 = inlined_call_operand.vmem [shape: bf16[128,128], index: 5, kind: input, shape index: {}]   ;;  %s1540_s6 = inlined_call_operand.vmem [shape: f32[1,128], index: 6, kind: input, shape index: {}]   ;;  %s1541_s7 = inlined_call_operand.vmem [shape: f32[16,128], index: 7, kind: output, shape index: {}]  }
   0x1   :  { %s20_s25 = sshll.u32 %s1381_s24, 4  ;;  %s21_s25 = int_to_ptr.vmem [resolvable:$true] %s20_s25 }
   0x2   :  { %s1367_s26 = scalar_lea.vmem %s21_s25, 8192  ;;  %p1372_p1 = scmp.lt.s32.totalorder %s21_s25, %s21_s25 }
   0x3   :  { %p1368_p0 = scmp.ne.s32.totalorder %s21_s25, %s1367_s26  ;;  %p1373_p2 = scmp.lt.s32.totalorder %s1367_s26, %s1367_s26 }
   0x5   :  { %p1374_p3 = por %p1373_p2, %p1372_p1 }
   0x7   :  { %p1375_p4 = pnand %p1374_p3, %p1368_p0 }
   0x9   :  { %1378 = shalt.err (!%p1375_p4)
}
   0xa   :  { %s1382_s27 = smov 64   ;;  %s1383_s28 = smov 4  }
   0xb   :  { %26 = dma.hbm_to_vmem [thread:$0]  %s1535_s1, 8192, %s21_s25, [#allocation3], %s1382_s27, %s1382_s27, %s1383_s28  }
   0xc   :  { %1379 = dma.done.wait [#allocation3], 8192  }
   0xd   :  { %1380 = vsyncadd [#allocation3], 4294959104  ;;  %v1271_v0 = vld [vmem:[#allocation2 + $0x78] sm:$0xff]   ;;  %v1275_v4 = vld [vmem:[#allocation2 + $0x70] sm:$0xff]   ;;  %vm1385_vm0 = vmmov 0  }
   0xe   :  { %v1272_v1 = vld [vmem:[#allocation2 + $0xf8] sm:$0xff]   ;;  %1120 = vmatprep.subr.bf16.mxu0 %v1271_v0  ;;  %v1276_v5 = vld [vmem:[#allocation2 + $0xf0] sm:$0xff]   ;;  %v1279_v8 = vld [vmem:[#allocation2 + $0x68] sm:$0xff]  }
   0xf   :  { %v1273_v2 = vld [vmem:[#allocation2 + $0x38] sm:$0xff]   ;;  %1142 = vmatprep.subr.bf16.mxu1 %v1272_v1  ;;  %v1277_v6 = vld [vmem:[#allocation2 + $0x30] sm:$0xff]   ;;  %v1280_v9 = vld [vmem:[#allocation2 + $0xe8] sm:$0xff]  }
  0x10   :  { %v1274_v3 = vld [vmem:[#allocation2 + $0xb8] sm:$0xff]   ;;  %1121 = vmatpush3.bf16.msra.mxu0 %v1273_v2  ;;  %v1278_v7 = vld [vmem:[#allocation2 + $0xb0] sm:$0xff]   ;;  %v1281_v10 = vld [vmem:[#allocation2 + $0x28] sm:$0xff]  }
  0x11   :  { %1143 = vmatpush3.bf16.msra.mxu1 %v1274_v3  ;;  %1122 = vmatprep.subr.bf16.mxu0 %v1275_v4  ;;  %v1282_v11 = vld [vmem:[#allocation2 + $0xa8] sm:$0xff]   ;;  %v1283_v12 = vld [vmem:[#allocation2 + $0x60] sm:$0xff]   ;;  %v1287_v16 = vld [vmem:[#allocation2 + $0x58] sm:$0xff]  }
  0x12   :  { %1144 = vmatprep.subr.bf16.mxu1 %v1276_v5  ;;  %v1284_v13 = vld [vmem:[#allocation2 + $0xe0] sm:$0xff]   ;;  %v1288_v17 = vld [vmem:[#allocation2 + $0xd8] sm:$0xff]   ;;  %v1291_v20 = vld [vmem:[#allocation2 + $0x50] sm:$0xff]  }
  0x13   :  { %v1285_v14 = vld [vmem:[#allocation2 + $0x20] sm:$0xff]   ;;  %v1289_v18 = vld [vmem:[#allocation2 + $0x18] sm:$0xff]   ;;  %v1292_v21 = vld [vmem:[#allocation2 + $0xd0] sm:$0xff]  }
  0x14   :  { %1123 = vmatpush3.bf16.msra.mxu0 %v1277_v6  ;;  %v1286_v15 = vld [vmem:[#allocation2 + $0xa0] sm:$0xff]   ;;  %v1290_v19 = vld [vmem:[#allocation2 + $0x98] sm:$0xff]   ;;  %v1293_v22 = vld [vmem:[#allocation2 + $0x10] sm:$0xff]  }
  0x15   :  { %1145 = vmatpush3.bf16.msra.mxu1 %v1278_v7  ;;  %1124 = vmatprep.subr.bf16.mxu0 %v1279_v8  ;;  %v1294_v23 = vld [vmem:[#allocation2 + $0x90] sm:$0xff]   ;;  %v1295_v24 = vld [vmem:[#allocation2 + $0x48] sm:$0xff]   ;;  %v1299_v28 = vld [vmem:[#allocation2 + $0x40] sm:$0xff]  }
  0x16   :  { %1146 = vmatprep.subr.bf16.mxu1 %v1280_v9  ;;  %v1296_v25 = vld [vmem:[#allocation2 + $0xc8] sm:$0xff]   ;;  %v1300_v29 = vld [vmem:[#allocation2 + $0xc0] sm:$0xff]   ;;  %v1303_v40 = vld [vmem:[#allocation2 + $0x178] sm:$0xff]  }
  0x17   :  { %v1297_v26 = vld [vmem:[#allocation2 + $0x8] sm:$0xff]   ;;  %v1301_v30 = vld [vmem:[#allocation2] sm:$0xff]   ;;  %v1304_v41 = vld [vmem:[#allocation2 + $0x1f8] sm:$0xff]  }
  0x18   :  { %1125 = vmatpush3.bf16.msra.mxu0 %v1281_v10  ;;  %v1298_v27 = vld [vmem:[#allocation2 + $0x88] sm:$0xff]   ;;  %v1302_v31 = vld [vmem:[#allocation2 + $0x80] sm:$0xff]   ;;  %v1305_v42 = vld [vmem:[#allocation2 + $0x138] sm:$0xff]  }
  0x19   :  { %1147 = vmatpush3.bf16.msra.mxu1 %v1282_v11  ;;  %1126 = vmatprep.subr.bf16.mxu0 %v1283_v12  ;;  %v41_v32 = vld [vmem:[%s1534_s0] sm:$0xff]  ;;  %v42_v34 = vld [vmem:[%s1534_s0 + $0x8] sm:$0xff]  ;;  %v1306_v43 = vld [vmem:[#allocation2 + $0x1b8] sm:$0xff]  }
  0x1a   :  { %1148 = vmatprep.subr.bf16.mxu1 %v1284_v13  ;;  %v45_v33 = vld [vmem:[%s1534_s0 + $0x20] sm:$0xff]  ;;  %v46_v37 = vld [vmem:[%s1534_s0 + $0x28] sm:$0xff]  ;;  %v1307_v44 = vld [vmem:[#allocation2 + $0x170] sm:$0xff]  }
  0x1b   :  { %v1030_v35 = vcombine.low %v41_v32, %v45_v33  ;;  %v1031_v36 = vcombine.high %v41_v32, %v45_v33  ;;  %v1032_v38 = vcombine.low %v42_v34, %v46_v37  ;;  %v1033_v39 = vcombine.high %v42_v34, %v46_v37  ;;  %v1308_v45 = vld [vmem:[#allocation2 + $0x1f0] sm:$0xff]   ;;  %v1311_v48 = vld [vmem:[#allocation2 + $0x168] sm:$0xff]   ;;  %v1315_v52 = vld [vmem:[#allocation2 + $0x160] sm:$0xff]  }
  0x1c   :  { %1127 = vmatpush3.bf16.msra.mxu0 %v1285_v14  ;;  %v1309_v46 = vld [vmem:[#allocation2 + $0x130] sm:$0xff]   ;;  %v1312_v49 = vld [vmem:[#allocation2 + $0x1e8] sm:$0xff]   ;;  %v1316_v53 = vld [vmem:[#allocation2 + $0x1e0] sm:$0xff]  }
  0x1d   :  { %1149 = vmatpush3.bf16.msra.mxu1 %v1286_v15  ;;  %1128 = vmatprep.subr.bf16.mxu0 %v1287_v16  ;;  %v1310_v47 = vld [vmem:[#allocation2 + $0x1b0] sm:$0xff]   ;;  %v1313_v50 = vld [vmem:[#allocation2 + $0x128] sm:$0xff]   ;;  %v1317_v54 = vld [vmem:[#allocation2 + $0x120] sm:$0xff]  }
  0x1e   :  { %1150 = vmatprep.subr.bf16.mxu1 %v1288_v17  ;;  %640 = vmatprep.mubr.bf16.mxu0 %v1031_v36  ;;  %v1314_v51 = vld [vmem:[#allocation2 + $0x1a8] sm:$0xff]   ;;  %v1318_v55 = vld [vmem:[#allocation2 + $0x1a0] sm:$0xff]   ;;  %v1319_v56 = vld [vmem:[#allocation2 + $0x158] sm:$0xff]   ;;  %v1384_v17 = vmov 0.0  }
  0x1f   :  { %681 = vmatprep.mubr.bf16.mxu1 %v1033_v39  ;;  %v1320_v57 = vld [vmem:[#allocation2 + $0x1d8] sm:$0xff]   ;;  %v1323_v60 = vld [vmem:[#allocation2 + $0x150] sm:$0xff]   ;;  %v1327_v0 = vld [vmem:[#allocation2 + $0x148] sm:$0xff]  }
  0x20   :  { %1129 = vmatpush3.bf16.msra.mxu0 %v1289_v18  ;;  %v1321_v58 = vld [vmem:[#allocation2 + $0x118] sm:$0xff]   ;;  %v1324_v61 = vld [vmem:[#allocation2 + $0x1d0] sm:$0xff]   ;;  %v1328_v1 = vld [vmem:[#allocation2 + $0x1c8] sm:$0xff]  }
  0x21   :  { %1151 = vmatpush3.bf16.msra.mxu1 %v1290_v19  ;;  %1130 = vmatprep.subr.bf16.mxu0 %v1291_v20  ;;  %v1322_v59 = vld [vmem:[#allocation2 + $0x198] sm:$0xff]   ;;  %v1325_v62 = vld [vmem:[#allocation2 + $0x110] sm:$0xff]   ;;  %v1329_v2 = vld [vmem:[#allocation2 + $0x108] sm:$0xff]  }
  0x22   :  { %1152 = vmatprep.subr.bf16.mxu1 %v1292_v21  ;;  %v1326_v63 = vld [vmem:[#allocation2 + $0x190] sm:$0xff]   ;;  %v1330_v3 = vld [vmem:[#allocation2 + $0x188] sm:$0xff]   ;;  %v1331_v4 = vld [vmem:[#allocation2 + $0x140] sm:$0xff]  }
  0x23   :  { %v1332_v5 = vld [vmem:[#allocation2 + $0x1c0] sm:$0xff]   ;;  %v43_v8 = vld [vmem:[%s1534_s0 + $0x10] sm:$0xff]  ;;  %v44_v12 = vld [vmem:[%s1534_s0 + $0x18] sm:$0xff] }
  0x24   :  { %1131 = vmatpush3.bf16.msra.mxu0 %v1293_v22  ;;  %v1333_v6 = vld [vmem:[#allocation2 + $0x100] sm:$0xff]   ;;  %v47_v9 = vld [vmem:[%s1534_s0 + $0x30] sm:$0xff]  ;;  %v48_v13 = vld [vmem:[%s1534_s0 + $0x38] sm:$0xff] }
  0x25   :  { %1153 = vmatpush3.bf16.msra.mxu1 %v1294_v23  ;;  %1132 = vmatprep.subr.bf16.mxu0 %v1295_v24  ;;  %v1334_v7 = vld [vmem:[#allocation2 + $0x180] sm:$0xff]   ;;  %v1034_v10 = vcombine.low %v43_v8, %v47_v9  ;;  %v1035_v11 = vcombine.high %v43_v8, %v47_v9  ;;  %v1036_v14 = vcombine.low %v44_v12, %v48_v13  ;;  %v1335_v16 = vld [vmem:[%s1537_s3 + $0x38] sm:$0xff]   ;;  %v1336_v18 = vld [vmem:[%s1537_s3 + $0x30] sm:$0xff]  }
  0x26   :  { %1154 = vmatprep.subr.bf16.mxu1 %v1296_v25  ;;  %v1037_v15 = vcombine.high %v44_v12, %v48_v13  ;;  %v1337_v19 = vld [vmem:[%s1537_s3 + $0x28] sm:$0xff]   ;;  %v1338_v20 = vld [vmem:[%s1537_s3 + $0x20] sm:$0xff]   ;;  %v1339_v21 = vld [vmem:[%s1537_s3 + $0x18] sm:$0xff]  }
  0x27   :  { %v1340_v22 = vld [vmem:[%s1537_s3 + $0x10] sm:$0xff]   ;;  %v1341_v23 = vld [vmem:[%s1537_s3 + $0x8] sm:$0xff]   ;;  %v1342_v24 = vld [vmem:[%s1537_s3] sm:$0xff]  }
  0x28   :  { %1133 = vmatpush3.bf16.msra.mxu0 %v1297_v26  ;;  %v1343_v25 = vld [vmem:[%s1539_s5 + $0x38] sm:$0xff]   ;;  %v1344_v26 = vld [vmem:[%s1539_s5 + $0x30] sm:$0xff]   ;;  %v1029_v37 = vld [vmem:[%s1536_s2] ss:$0 sm:$0xff] }
  0x29   :  { %1155 = vmatpush3.bf16.msra.mxu1 %v1298_v27  ;;  %1134 = vmatprep.subr.bf16.mxu0 %v1299_v28  ;;  %v1345_v27 = vld [vmem:[%s1539_s5 + $0x28] sm:$0xff]   ;;  %v1346_v28 = vld [vmem:[%s1539_s5 + $0x20] sm:$0xff]  }
  0x2a   :  { %1156 = vmatprep.subr.bf16.mxu1 %v1300_v29  ;;  %v1347_v29 = vld [vmem:[%s1539_s5 + $0x18] sm:$0xff]  }
  0x2c   :  { %1135 = vmatpush3.bf16.msra.mxu0 %v1301_v30 }
  0x2d   :  { %1157 = vmatpush3.bf16.msra.mxu1 %v1302_v31  ;;  %1164 = vmatprep.subr.bf16.mxu0 %v1303_v40 }
  0x2e   :  { %1186 = vmatprep.subr.bf16.mxu1 %v1304_v41 }
  0x2f   :  { %641 = vmatmul.mubr.bf16.vlgmr.msra.gmra.mxu0 %v1030_v35 }
  0x30   :  { %682 = vmatmul.mubr.bf16.vlgmr.msra.gmra.mxu1 %v1032_v38  ;;  %1165 = vmatpush3.bf16.msra.mxu0 %v1305_v42 }
  0x31   :  { %1187 = vmatpush3.bf16.msra.mxu1 %v1306_v43  ;;  %1166 = vmatprep.subr.bf16.mxu0 %v1307_v44 }
  0x32   :  { %1188 = vmatprep.subr.bf16.mxu1 %v1308_v45  ;;  %722 = vmatprep.mubr.bf16.mxu0 %v1035_v11 }
  0x33   :  { %763 = vmatprep.mubr.bf16.mxu1 %v1037_v15  ;;  %v1111_v15 = vld [vmem:[%s1540_s6] ss:$0 sm:$0xff] }
  0x34   :  { %1167 = vmatpush3.bf16.msra.mxu0 %v1309_v46 }
  0x35   :  { %1189 = vmatpush3.bf16.msra.mxu1 %v1310_v47  ;;  %1168 = vmatprep.subr.bf16.mxu0 %v1311_v48 }
  0x36   :  { %1190 = vmatprep.subr.bf16.mxu1 %v1312_v49 }
  0x38   :  { %1169 = vmatpush3.bf16.msra.mxu0 %v1313_v50 }
  0x39   :  { %1191 = vmatpush3.bf16.msra.mxu1 %v1314_v51  ;;  %1170 = vmatprep.subr.bf16.mxu0 %v1315_v52 }
  0x3a   :  { %1192 = vmatprep.subr.bf16.mxu1 %v1316_v53 }
  0x3c   :  { %1171 = vmatpush3.bf16.msra.mxu0 %v1317_v54 }
  0x3d   :  { %1193 = vmatpush3.bf16.msra.mxu1 %v1318_v55  ;;  %1172 = vmatprep.subr.bf16.mxu0 %v1319_v56 }
  0x3e   :  { %1194 = vmatprep.subr.bf16.mxu1 %v1320_v57 }
  0x40   :  { %1173 = vmatpush3.bf16.msra.mxu0 %v1321_v58 }
  0x41   :  { %1195 = vmatpush3.bf16.msra.mxu1 %v1322_v59  ;;  %1174 = vmatprep.subr.bf16.mxu0 %v1323_v60 }
  0x42   :  { %1196 = vmatprep.subr.bf16.mxu1 %v1324_v61 }
  0x44   :  { %1175 = vmatpush3.bf16.msra.mxu0 %v1325_v62 }
  0x45   :  { %1197 = vmatpush3.bf16.msra.mxu1 %v1326_v63  ;;  %1176 = vmatprep.subr.bf16.mxu0 %v1327_v0 }
  0x46   :  { %1198 = vmatprep.subr.bf16.mxu1 %v1328_v1 }
  0x48   :  { %1177 = vmatpush3.bf16.msra.mxu0 %v1329_v2  ;;  %v1348_v2 = vld [vmem:[%s1539_s5 + $0x10] sm:$0xff]  }
  0x49   :  { %1199 = vmatpush3.bf16.msra.mxu1 %v1330_v3  ;;  %1178 = vmatprep.subr.bf16.mxu0 %v1331_v4  ;;  %v1349_v3 = vld [vmem:[%s1539_s5 + $0x8] sm:$0xff]   ;;  %v1350_v4 = vld [vmem:[%s1539_s5] sm:$0xff]  }
  0x4a   :  { %1200 = vmatprep.subr.bf16.mxu1 %v1332_v5  ;;  %v1102_v5 = vld [vmem:[%s1538_s4] ss:$0 sm:$0xff] }
  0x4c   :  { %1179 = vmatpush3.bf16.msra.mxu0 %v1333_v6 }
  0x4d   :  { %1201 = vmatpush3.bf16.msra.mxu1 %v1334_v7  ;;  %1226 = vmatprep.subr.bf16.mxu0 %v1384_v17 }
  0x4e   :  { %1246 = vmatprep.subr.bf16.mxu1 %v1384_v17 }
  0x4f   :  { %723 = vmatmul.mubr.bf16.vlgmr.msra.gmra.mxu0 %v1034_v10 }
  0x50   :  { %764 = vmatmul.mubr.bf16.vlgmr.msra.gmra.mxu1 %v1036_v14  ;;  %1227 = vmatpush3.bf16.msra.mxu0 %v1335_v16 }
  0x51   :  { %1228 = vmatprep.subr.bf16.mxu0 %v1384_v17  ;;  %1242 = vmatprep.mubr.msk.bf16.mxu0 %vm1385_vm0, %v1384_v17 }
  0x52   :  { %1262 = vmatprep.mubr.msk.bf16.mxu1 %vm1385_vm0, %v1384_v17  ;;  %1247 = vmatpush3.bf16.msra.mxu1 %v1343_v25 }
  0x53   :  { %1248 = vmatprep.subr.bf16.mxu1 %v1384_v17 }
  0x54   :  { %1229 = vmatpush3.bf16.msra.mxu0 %v1336_v18 }
  0x55   :  { %1230 = vmatprep.subr.bf16.mxu0 %v1384_v17 }
  0x56   :  { %1249 = vmatpush3.bf16.msra.mxu1 %v1344_v26 }
  0x57   :  { %1250 = vmatprep.subr.bf16.mxu1 %v1384_v17 }
  0x58   :  { %1231 = vmatpush3.bf16.msra.mxu0 %v1337_v19 }
  0x59   :  { %1232 = vmatprep.subr.bf16.mxu0 %v1384_v17 }
  0x5a   :  { %1251 = vmatpush3.bf16.msra.mxu1 %v1345_v27 }
  0x5b   :  { %1252 = vmatprep.subr.bf16.mxu1 %v1384_v17 }
  0x5c   :  { %1233 = vmatpush3.bf16.msra.mxu0 %v1338_v20 }
  0x5d   :  { %1234 = vmatprep.subr.bf16.mxu0 %v1384_v17 }
  0x5e   :  { %1253 = vmatpush3.bf16.msra.mxu1 %v1346_v28 }
  0x5f   :  { %1254 = vmatprep.subr.bf16.mxu1 %v1384_v17 }
  0x60   :  { %1235 = vmatpush3.bf16.msra.mxu0 %v1339_v21 }
  0x61   :  { %1236 = vmatprep.subr.bf16.mxu0 %v1384_v17 }
  0x62   :  { %1255 = vmatpush3.bf16.msra.mxu1 %v1347_v29 }
  0x63   :  { %1256 = vmatprep.subr.bf16.mxu1 %v1384_v17 }
  0x64   :  { %1237 = vmatpush3.bf16.msra.mxu0 %v1340_v22 }
  0x65   :  { %1238 = vmatprep.subr.bf16.mxu0 %v1384_v17 }
  0x66   :  { %1257 = vmatpush3.bf16.msra.mxu1 %v1348_v2 }
  0x67   :  { %1258 = vmatprep.subr.bf16.mxu1 %v1384_v17 }
  0x68   :  { %1239 = vmatpush3.bf16.msra.mxu0 %v1341_v23 }
  0x69   :  { %1240 = vmatprep.subr.bf16.mxu0 %v1384_v17 }
  0x6a   :  { %1259 = vmatpush3.bf16.msra.mxu1 %v1349_v3 }
  0x6b   :  { %1260 = vmatprep.subr.bf16.mxu1 %v1384_v17 }
  0x6c   :  { %1241 = vmatpush3.bf16.msra.mxu0 %v1342_v24 }
  0x6e   :  { %1261 = vmatpush3.bf16.msra.mxu1 %v1350_v4 }
  0xef   :  { %v1136_v30 = vpop.f32.mrf.mxu0 }
  0xf0   :  { %v1158_v31 = vpop.f32.mrf.mxu1 }
  0xf1   :  { %v1137_v32 = vpop.f32.mrf.mxu0 }
  0xf2   :  { %v1159_v33 = vpop.f32.mrf.mxu1  ;;  %v1138_v35 = vadd.f32 %v1137_v32, %v1136_v30 }
  0xf3   :  { %v1139_v34 = vpop.f32.mrf.mxu0  ;;  %v1160_v40 = vadd.f32 %v1159_v33, %v1158_v31 }
  0xf4   :  { %v1161_v36 = vpop.f32.mrf.mxu1  ;;  %v643_v39 = vadd.f32 %v1138_v35, %v1029_v37 }
  0xf5   :  { %v1140_v38 = vpop.f32.mrf.mxu0 }
  0xf6   :  { %v1141_v41 = vadd.f32 %v1140_v38, %v1139_v34  ;;  %v1162_v42 = vpop.f32.mrf.mxu1  ;;  %v684_v46 = vadd.f32 %v1160_v40, %v643_v39 }
  0xf7   :  { %v1163_v51 = vadd.f32 %v1162_v42, %v1161_v36 }
  0xf8   :  { %v646_v47 = vadd.f32 %v1141_v41, %v1029_v37 }
  0xfa   :  { %v687_v55 = vadd.f32 %v1163_v51, %v646_v47 }
 0x10f   :  { %v1180_v43 = vpop.f32.mrf.mxu0 }
 0x110   :  { %v1202_v44 = vpop.f32.mrf.mxu1 }
 0x111   :  { %v1181_v45 = vpop.f32.mrf.mxu0 }
 0x112   :  { %v1182_v48 = vadd.f32 %v1181_v45, %v1180_v43  ;;  %v1203_v49 = vpop.f32.mrf.mxu1 }
 0x113   :  { %v1183_v50 = vpop.f32.mrf.mxu0  ;;  %v1204_v56 = vadd.f32 %v1203_v49, %v1202_v44 }
 0x114   :  { %v725_v52 = vadd.f32 %v1182_v48, %v684_v46  ;;  %v1205_v53 = vpop.f32.mrf.mxu1 }
 0x115   :  { %v1184_v54 = vpop.f32.mrf.mxu0 }
 0x116   :  { %v1185_v57 = vadd.f32 %v1184_v54, %v1183_v50  ;;  %v1206_v58 = vpop.f32.mrf.mxu1  ;;  %v766_v59 = vadd.f32 %v1204_v56, %v725_v52 }
 0x117   :  { %v1207_v61 = vadd.f32 %v1206_v58, %v1205_v53 }
 0x118   :  { %v728_v60 = vadd.f32 %v1185_v57, %v687_v55  ;;  %v772_v63 = vmax.f32 %v766_v59, 0.0 }
 0x11a   :  { %v769_v62 = vadd.f32 %v1207_v61, %v728_v60 }
 0x11c   :  { %v773_v0 = vmax.f32 %v769_v62, 0.0 }
 0x11e   :  { %v774_v1 = vpack.c.bf16 %v773_v0, %v772_v63 }
 0x120   :  { %1243 = vmatmul.mubr.bf16.vlgmr.msra.gmra.mxu0 %v774_v1 }
 0x1e0   :  { %v880_v6 = vpop.f32.mrf.mxu0 }
 0x1e1   :  { %v881_v8 = vadd.f32 %v1102_v5, %v880_v6 }
 0x1e2   :  { %v1244_v7 = vpop.f32.mrf.mxu0 }
 0x1e3   :  { %v887_v12 = vmax.f32 %v881_v8, 0.0 }
 0x1e4   :  { %v883_v9 = vpop.f32.mrf.mxu0 }
 0x1e5   :  { %v884_v10 = vadd.f32 %v1102_v5, %v883_v9 }
 0x1e6   :  { %v1245_v11 = vpop.f32.mrf.mxu0 }
 0x1e7   :  { %v888_v13 = vmax.f32 %v884_v10, 0.0 }
 0x1e9   :  { %v889_v14 = vpack.c.bf16 %v888_v13, %v887_v12 }
 0x1eb   :  { %1263 = vmatmul.mubr.bf16.vlgmr.msra.gmra.mxu1 %v889_v14 }
 0x2ab   :  { %v995_v16 = vpop.f32.mrf.mxu1 }
 0x2ac   :  { %v996_v17 = vadd.f32 %v1111_v15, %v995_v16 }
 0x2ad   :  { %v1264_v18 = vpop.f32.mrf.mxu1 }
 0x2ae   :  { %1002 = vmax.xlane.f32.xlu0 %v996_v17 }
 0x2af   :  { %v998_v19 = vpop.f32.mrf.mxu1 }
 0x2b0   :  { %v999_v20 = vadd.f32 %v1111_v15, %v998_v19 }
 0x2b1   :  { %v1265_v21 = vpop.f32.mrf.mxu1 }
 0x2b2   :  { %1004 = vmax.xlane.f32.xlu0 %v999_v20 }
 0x337   :  { %v1003_v22 = vpop.xlane.xlu0 %1002 }
 0x338   :  { %v1006_v23 = vsub.f32 %v996_v17, %v1003_v22 }
 0x33a   :  { %v1008_v24 = vmul.f32 1.442695, %v1006_v23 }
 0x33b   :  { %v1005_v25 = vpop.xlane.xlu0 %1004 }
 0x33c   :  { %v1007_v26 = vsub.f32 %v999_v20, %v1005_v25  ;;  %1351 = vpow2.f32 %v1008_v24 }
 0x33e   :  { %v1010_v27 = vmul.f32 1.442695, %v1007_v26 }
 0x340   :  { %1353 = vpow2.f32 %v1010_v27 }
 0x349   :  { %v1352_v28 = vpop.eup %1351 }
 0x34a   :  { %1012 = vadd.xlane.f32.xlu1 %v1352_v28 }
 0x34d   :  { %v1354_v29 = vpop.eup %1353 }
 0x34e   :  { %1014 = vadd.xlane.f32.xlu1 %v1354_v29 }
 0x3d3   :  { %v1013_v30 = vpop.xlane.xlu1 %1012 }
 0x3d4   :  { %1355 = vlog2.f32 %v1013_v30 }
 0x3d7   :  { %v1015_v31 = vpop.xlane.xlu1 %1014 }
 0x3d8   :  { %1357 = vlog2.f32 %v1015_v31 }
 0x3e1   :  { %v1356_v32 = vpop.eup %1355 }
 0x3e2   :  { %v1017_v33 = vmul.f32 0.6931472, %v1356_v32 }
 0x3e4   :  { %v1020_v34 = vsub.f32 %v1006_v23, %v1017_v33 }
 0x3e5   :  { %v1358_v35 = vpop.eup %1357 }
 0x3e6   :  { %1022 = vst [vmem:[%s1541_s7] sm:$0xff] %v1020_v34  ;;  %v1019_v36 = vmul.f32 0.6931472, %v1358_v35 }
 0x3e8   :  { %v1021_v37 = vsub.f32 %v1007_v26, %v1019_v36 }
 0x3ea   :  { %1023 = vst [vmem:[%s1541_s7 + $0x8] sm:$0xff] %v1021_v37 }
 0x3eb   :  { %1028 = vsyncpa [#allocation3], 1 }

</bundles_post_ra>
